<compile_context>
chip_gen: v6e
topology: v6e:2x2x1
jax: 0.10.0
libtpu: 0.0.40
codegen_flags: <defaults>
</compile_context>

<pallas_src>
import jax
import jax.numpy as jnp
from jax.experimental import pallas as pl
from jax.experimental.pallas import tpu as pltpu

INPUT_SIZE = 784
HIDDEN_SIZE = 100
NUM_CLASSES = 10

HIDDEN_PAD = 128   # 100 -> 128 lanes (lane-dense hidden tile)
OUT_PAD = 128      # 10  -> 128 lanes (lane-dense, unmasked output store)

DEFAULT_MAX_TB = 1024  # batch-tile cap; ~86% of HBM roofline, tiny VMEM footprint everywhere


def _round_up(n, m):
    return ((n + m - 1) // m) * m


def mlp_kernel(x_ref, w1_ref, b1_ref, w2_ref, b2_ref, o_ref):
    # Cast activations to bf16 in-kernel (VPU) right before the MXU dot — avoids a separate
    # wrapper-side XLA cast that would add a full extra HBM read+write pass over x.
    xb = x_ref[...].astype(jnp.bfloat16)
    # First matmul on the MXU: bf16 operands, f32 accumulation.
    h = jnp.dot(xb, w1_ref[...], preferred_element_type=jnp.float32)
    # Fused epilogue (bias + ReLU) in f32 on the VPU.
    h = jnp.maximum(h + b1_ref[...], 0.0)
    # Second matmul: recast activations to bf16 for the bf16 MXU path, accumulate in f32.
    out = jnp.dot(h.astype(jnp.bfloat16), w2_ref[...], preferred_element_type=jnp.float32)
    o_ref[...] = (out + b2_ref[...]).astype(o_ref.dtype)


def prepare_params(w1, b1, w2, b2):
    """Pad to lane-aligned shapes (hidden/out -> 128) and cast matmul weights to bf16.

    Done once, outside the kernel. Zero-padded columns contribute zero (and ReLU(0)=0), so
    semantics match the original nn.Linear layers exactly (up to bf16 rounding of the weights).
    Weights are stored transposed vs. PyTorch: W1 (784,100), W2 (100,10), so y = x @ W."""
    w1p = jnp.zeros((INPUT_SIZE, HIDDEN_PAD), jnp.bfloat16)
    w1p = w1p.at[:, :HIDDEN_SIZE].set(w1.astype(jnp.bfloat16))
    b1p = jnp.zeros((1, HIDDEN_PAD), jnp.float32)
    b1p = b1p.at[:, :HIDDEN_SIZE].set(b1.reshape(1, -1).astype(jnp.float32))
    w2p = jnp.zeros((HIDDEN_PAD, OUT_PAD), jnp.bfloat16)
    w2p = w2p.at[:HIDDEN_SIZE, :NUM_CLASSES].set(w2.astype(jnp.bfloat16))
    b2p = jnp.zeros((1, OUT_PAD), jnp.float32)
    b2p = b2p.at[:, :NUM_CLASSES].set(b2.reshape(1, -1).astype(jnp.float32))
    return w1p, b1p, w2p, b2p


def neural_net_forward(x, w1p, b1p, w2p, b2p, *, tb=None, return_padded=False):
    """x: (B, 784) -> logits (B, 10) f32 (or the (B, 128) padded slab if return_padded=True).

    Params must come from prepare_params()."""
    B = x.shape[0]
    if tb is None:
        # Aim for >= 2 grid steps when B allows it so the "parallel" batch axis actually feeds
        # both TensorCores on v7x; cap the tile to amortize ~0.35 us/step overhead.
        tb = min(DEFAULT_MAX_TB, _round_up(pl.cdiv(B, 2), 8))
    tb = max(8, _round_up(tb, 8))          # sublane alignment for the (tb, 784) block
    num_tiles = pl.cdiv(B, tb)             # partial last block: rows independent, writes masked

    # VMEM budget from the actual tile footprints (double-buffered x & out tiles + resident
    # weights), capped at 48 MiB to keep headroom under v7x's 64 MiB/TC physical VMEM.
    x_tile_bytes = 2 * tb * INPUT_SIZE * x.dtype.itemsize   # double-buffered input tile
    o_tile_bytes = 2 * tb * OUT_PAD * 4                     # f32, double-buffered
    weight_bytes = (INPUT_SIZE * HIDDEN_PAD + HIDDEN_PAD * OUT_PAD) * 2 \
                   + (HIDDEN_PAD + OUT_PAD) * 4
    vmem_limit = int((x_tile_bytes + o_tile_bytes + weight_bytes) * 1.5) + (4 << 20)
    vmem_limit = max(8 << 20, min(vmem_limit, 48 << 20))

    out_pad = pl.pallas_call(
        mlp_kernel,
        out_shape=jax.ShapeDtypeStruct((B, OUT_PAD), jnp.float32),
        grid=(num_tiles,),
        in_specs=[
            pl.BlockSpec((tb, INPUT_SIZE), lambda i: (i, 0)),          # batch tile of x (orig dtype)
            pl.BlockSpec((INPUT_SIZE, HIDDEN_PAD), lambda i: (0, 0)),  # W1 resident across steps
            pl.BlockSpec((1, HIDDEN_PAD), lambda i: (0, 0)),           # b1 resident
            pl.BlockSpec((HIDDEN_PAD, OUT_PAD), lambda i: (0, 0)),     # W2 resident
            pl.BlockSpec((1, OUT_PAD), lambda i: (0, 0)),              # b2 resident
        ],
        out_specs=pl.BlockSpec((tb, OUT_PAD), lambda i: (i, 0)),       # lane-dense output slab
        compiler_params=pltpu.CompilerParams(
            dimension_semantics=("parallel",),                         # v7x: shard batch over 2 TCs
            vmem_limit_bytes=vmem_limit,
        ),
    )(x, w1p, b1p, w2p, b2p)

    if return_padded:
        return out_pad                      # consumer slices [:, :10]; XLA fuses it downstream
    return out_pad[:, :NUM_CLASSES]


def init_params(key):
    """Deterministic init mimicking nn.Linear's default U(-1/sqrt(fan_in), 1/sqrt(fan_in))."""
    k1, k2, k3, k4 = jax.random.split(key, 4)
    bound1 = 1.0 / jnp.sqrt(INPUT_SIZE)
    bound2 = 1.0 / jnp.sqrt(HIDDEN_SIZE)
    w1 = jax.random.uniform(k1, (INPUT_SIZE, HIDDEN_SIZE), jnp.float32, -bound1, bound1)
    b1 = jax.random.uniform(k2, (HIDDEN_SIZE,), jnp.float32, -bound1, bound1)
    w2 = jax.random.uniform(k3, (HIDDEN_SIZE, NUM_CLASSES), jnp.float32, -bound2, bound2)
    b2 = jax.random.uniform(k4, (NUM_CLASSES,), jnp.float32, -bound2, bound2)
    return w1, b1, w2, b2


def reference_forward(x, w1, b1, w2, b2):
    """Same math as the kernel (bf16 operands, f32 accumulation) for a tight comparison.

    Note: vs a true f32 PyTorch forward, bf16 weights/activations give ~1e-2-level relative
    error in logits — acceptable for this MLP head."""
    xb = x.astype(jnp.bfloat16).astype(jnp.float32)
    w1b = w1.astype(jnp.bfloat16).astype(jnp.float32)
    w2b = w2.astype(jnp.bfloat16).astype(jnp.float32)
    h = jnp.maximum(xb @ w1b + b1.reshape(1, -1), 0.0)
    hb = h.astype(jnp.bfloat16).astype(jnp.float32)
    return hb @ w2b + b2.reshape(1, -1)


if __name__ == "__main__":
    key = jax.random.PRNGKey(0)
    kx, kp = jax.random.split(key)

    # Small batch that is NOT a multiple of the tile size -> exercises the masked partial
    # last block (tb=16, grid=2, last block has 4 live rows) and the 2-tile parallel path.
    batch = 20
    x = jax.random.normal(kx, (batch, INPUT_SIZE), jnp.float32)
    w1, b1, w2, b2 = init_params(kp)
    w1p, b1p, w2p, b2p = prepare_params(w1, b1, w2, b2)

    out = jax.block_until_ready(neural_net_forward(x, w1p, b1p, w2p, b2p))
    ref = reference_forward(x, w1, b1, w2, b2)
    assert out.shape == (batch, NUM_CLASSES)
    assert jnp.allclose(out, ref, atol=2e-3, rtol=2e-3), "mismatch vs reference"

    # Also sanity-check the single-tile path (batch=8, exact multiple of the sublane size).
    out_small = jax.block_until_ready(neural_net_forward(x[:8], w1p, b1p, w2p, b2p))
    assert out_small.shape == (8, NUM_CLASSES)
    assert jnp.allclose(out_small, ref[:8], atol=2e-3, rtol=2e-3), "small-batch mismatch"

    print("KERNEL_OK")
</pallas_src>

<mosaic_0001>
module attributes {stable_mosaic.version = 11 : i64} {
  func.func @mlp_kernel(%arg0: i32, %arg1: memref<16x784xf32, #tpu.memory_space<vmem>>, %arg2: memref<784x128xbf16, #tpu.memory_space<vmem>>, %arg3: memref<1x128xf32, #tpu.memory_space<vmem>>, %arg4: memref<128x128xbf16, #tpu.memory_space<vmem>>, %arg5: memref<1x128xf32, #tpu.memory_space<vmem>>, %arg6: memref<16x128xf32, #tpu.memory_space<vmem>>) attributes {dimension_semantics = [#tpu.dimension_semantics<parallel>], iteration_bounds = array<i64: 2>, scalar_prefetch = 0 : i64, scratch_operands = 0 : i64, tpu.core_type = #tpu.core_type<tc>, window_params = [{transform_indices = @transform_0, window_bounds = array<i64: 16, 784>}, {pipeline_mode = #tpu.pipeline_mode<synchronous>, transform_indices = @transform_1, window_bounds = array<i64: 784, 128>}, {pipeline_mode = #tpu.pipeline_mode<synchronous>, transform_indices = @transform_2, window_bounds = array<i64: 1, 128>}, {pipeline_mode = #tpu.pipeline_mode<synchronous>, transform_indices = @transform_3, window_bounds = array<i64: 128, 128>}, {pipeline_mode = #tpu.pipeline_mode<synchronous>, transform_indices = @transform_4, window_bounds = array<i64: 1, 128>}, {transform_indices = @transform_5, window_bounds = array<i64: 16, 128>}]} {
    %c0 = arith.constant 0 : index
    %c0_0 = arith.constant 0 : index
    %0 = vector.load %arg1[%c0, %c0_0] : memref<16x784xf32, #tpu.memory_space<vmem>>, vector<16x784xf32>
    %1 = arith.truncf %0 : vector<16x784xf32> to vector<16x784xbf16>
    %c0_1 = arith.constant 0 : index
    %c0_2 = arith.constant 0 : index
    %2 = vector.load %arg2[%c0_1, %c0_2] : memref<784x128xbf16, #tpu.memory_space<vmem>>, vector<784x128xbf16>
    %cst = arith.constant dense<0.000000e+00> : vector<16x128xf32>
    %3 = tpu.matmul %1, %2, %cst {dimension_numbers = #tpu.dot_dimension_numbers<[1], [0], [0], [1], [0, 0, 1, 1], [], []>} : vector<16x784xbf16>, vector<784x128xbf16>, vector<16x128xf32> -> vector<16x128xf32>
    %c0_3 = arith.constant 0 : index
    %c0_4 = arith.constant 0 : index
    %4 = vector.load %arg3[%c0_3, %c0_4] : memref<1x128xf32, #tpu.memory_space<vmem>>, vector<1x128xf32>
    %5 = vector.broadcast %4 : vector<1x128xf32> to vector<16x128xf32>
    %6 = arith.addf %3, %5 : vector<16x128xf32>
    %cst_5 = arith.constant 0.000000e+00 : f32
    %7 = vector.broadcast %cst_5 : f32 to vector<16x128xf32>
    %8 = arith.maximumf %6, %7 : vector<16x128xf32>
    %9 = arith.truncf %8 : vector<16x128xf32> to vector<16x128xbf16>
    %c0_6 = arith.constant 0 : index
    %c0_7 = arith.constant 0 : index
    %10 = vector.load %arg4[%c0_6, %c0_7] : memref<128x128xbf16, #tpu.memory_space<vmem>>, vector<128x128xbf16>
    %cst_8 = arith.constant dense<0.000000e+00> : vector<16x128xf32>
    %11 = tpu.matmul %9, %10, %cst_8 {dimension_numbers = #tpu.dot_dimension_numbers<[1], [0], [0], [1], [0, 0, 1, 1], [], []>} : vector<16x128xbf16>, vector<128x128xbf16>, vector<16x128xf32> -> vector<16x128xf32>
    %c0_9 = arith.constant 0 : index
    %c0_10 = arith.constant 0 : index
    %12 = vector.load %arg5[%c0_9, %c0_10] : memref<1x128xf32, #tpu.memory_space<vmem>>, vector<1x128xf32>
    %13 = vector.broadcast %12 : vector<1x128xf32> to vector<16x128xf32>
    %14 = arith.addf %11, %13 : vector<16x128xf32>
    %c0_11 = arith.constant 0 : index
    %c0_12 = arith.constant 0 : index
    %15 = vector.load %arg6[%c0_11, %c0_12] : memref<16x128xf32, #tpu.memory_space<vmem>>, vector<16x128xf32>
    tpu.vector_store %arg6[%c0_11, %c0_12], %14 {strides = array<i32>} : memref<16x128xf32, #tpu.memory_space<vmem>>, vector<16x128xf32>,
    return
  }
  func.func @transform_0(%arg0: i32) -> (i32, i32) {
    %c0_i32 = arith.constant 0 : i32
    %c0_i32_0 = arith.constant 0 : i32
    return %arg0, %c0_i32 : i32, i32
  }
  func.func @transform_1(%arg0: i32) -> (i32, i32) {
    %c0_i32 = arith.constant 0 : i32
    %c0_i32_0 = arith.constant 0 : i32
    %c0_i32_1 = arith.constant 0 : i32
    return %c0_i32, %c0_i32_0 : i32, i32
  }
  func.func @transform_2(%arg0: i32) -> (i32, i32) {
    %c0_i32 = arith.constant 0 : i32
    %c0_i32_0 = arith.constant 0 : i32
    %c0_i32_1 = arith.constant 0 : i32
    return %c0_i32, %c0_i32_0 : i32, i32
  }
  func.func @transform_3(%arg0: i32) -> (i32, i32) {
    %c0_i32 = arith.constant 0 : i32
    %c0_i32_0 = arith.constant 0 : i32
    %c0_i32_1 = arith.constant 0 : i32
    return %c0_i32, %c0_i32_0 : i32, i32
  }
  func.func @transform_4(%arg0: i32) -> (i32, i32) {
    %c0_i32 = arith.constant 0 : i32
    %c0_i32_0 = arith.constant 0 : i32
    %c0_i32_1 = arith.constant 0 : i32
    return %c0_i32, %c0_i32_0 : i32, i32
  }
  func.func @transform_5(%arg0: i32) -> (i32, i32) {
    %c0_i32 = arith.constant 0 : i32
    %c0_i32_0 = arith.constant 0 : i32
    return %arg0, %c0_i32 : i32, i32
  }
}

</mosaic_0001>

<bundles_post_ra>
// kernel: tpu_custom_call.1
= control target key start
LH: loop header
LB: loop body
LE: loop exit
PB: predicated region body
PF: predicated region fallthrough
CT: control target
= control target key end

     0   :  { %10 = vsyncpa [#allocation3], 0  ;;  %s1864_s0 = inlined_call_operand.hbm [shape: f32[20,784], index: 0, kind: input, shape index: {}]   ;;  %s1865_s1 = inlined_call_operand.hbm [shape: bf16[784,128], index: 1, kind: input, shape index: {}]   ;;  %s1866_s2 = inlined_call_operand.vmem [shape: f32[1,128], index: 2, kind: input, shape index: {}]   ;;  %s1867_s3 = inlined_call_operand.hbm [shape: bf16[128,128], index: 3, kind: input, shape index: {}]   ;;  %s1868_s4 = inlined_call_operand.vmem [shape: f32[1,128], index: 4, kind: input, shape index: {}]   ;;  %s1869_s5 = inlined_call_operand.hbm [shape: f32[20,128], index: 5, kind: output, shape index: {}]  }
   0x1   :  { %12 = vsyncpa [#allocation3 + $0x1], 0 }
   0x2   :  { %13 = vsyncpa [#allocation6], 0 }
   0x3   :  { %14 = vsyncpa [#allocation4], 0 }
   0x4   :  { %16 = vsyncpa [#allocation4 + $0x1], 0  ;;  %s1616_s18 = smov 0   ;;  %s1618_s19 = smov 0  }
   0x5   :  { %s1620_s20 = smov 0   ;;  %s1622_s21 = smov 0  }
   0x6 LB: > { %s1637_s22 = sadd.s32 4294967295, %s1572_s21   ;;  %s1109_s23 = sadd.s32 4294967294, %s1572_s21   ;;  %s1572_s21 = sphi %s1622_s21, %s1886_s21   ;;  %s1568_s20 = sphi %s1620_s20, %s1885_s20   ;;  %s1564_s19 = sphi %s1618_s19, %s1884_s19   ;;  %s1560_s18 = sphi %s1616_s18, %s1883_s18  }
   0x7   : > { %s1641_s24 = sadd.s32 1, %s1572_s21   ;;  %s29_s25 = sadd.s32 1, %s1568_s20 }
   0x8   : > { %s26_s26 = ssub.s32 %s1572_s21, %s1641_s24  ;;  %p36_p0 = scmp.ne.s32.totalorder %s1568_s20, %s1564_s19 }
   0x9   : > { %p27_p1 = scmp.eq.s32.totalorder %s26_s26, 0  ;;  %p37_p2 = scmp.eq.s32.totalorder %s1572_s21, 0 }
   0xa   : > { %p42_p3 = scmp.ne.s32.totalorder %s1564_s19, %s1560_s18  ;;  %p1870_p4 = scmp.eq.s32.totalorder %s1637_s22, 0 }
   0xb   : > { %s1653_s27 = scalar_select %p27_p1, %s1568_s20, %s29_s25  }
   0xc   : > { %p1655_p5 = por %p37_p2, %p36_p0  ;;  %p1661_p6 = por %p1870_p4, %p42_p3 }
   0xd   : > { %p150_p7 = scmp.eq.s32.totalorder %s1637_s22, 1  ;;  %p156_p8 = scmp.eq.s32.totalorder %s1109_s23, 1 }
   0xe   : > { %s1873_s29 = scalar_select %p1661_p6, 1, 0 }
   0xf   : > { %p1110_p9 = scmp.ge.s32.totalorder %s1572_s21, 1  ;;  %p163_p10 = scmp.lt.s32.totalorder %s1572_s21, 3 }
  0x10   : > { %p1668_p11 = por %p150_p7, %p36_p0  ;;  %p1672_p12 = por %p156_p8, %p42_p3 }
  0x11   : > { %p1676_p13 = pnand %p1110_p9, %p163_p10  ;;  %s1574_s8 = smov [#allocation5]  }
  0x12   : > { %s1874_s30 = scalar_select %p1668_p11, 1, 0 }
  0x13   : > { %s1875_s6 = scalar_select %p1672_p12, 1, 0 }
  0x14   : > { %p1311_p1 = pneg %p1676_p13  ;;  %s175_s9 = sshll.u32 %s1574_s8, 4  ;;  %s176_s9 = int_to_ptr.vmem [resolvable:$true] %s175_s9 }
  0x15   : > { %s1575_s11 = smov [#allocation7]   ;;  %s1437_s13 = scalar_lea.vmem %s176_s9, 6272 }
  0x16   : > { %p1684_p2 = pnand %p1311_p1, %p1870_p4  ;;  %s191_s12 = sshll.u32 %s1575_s11, 4  ;;  %s192_s12 = int_to_ptr.vmem [resolvable:$true] %s191_s12 }
  0x17   : > { %p1438_p3 = scmp.ne.s32.totalorder %s176_s9, %s1437_s13  ;;  %p1445_p9 = scmp.lt.s32.totalorder %s176_s9, %s176_s9 }
  0x18   : > { %p1428_p0 = pneg %p1684_p2  ;;  %p1446_p10 = scmp.lt.s32.totalorder %s1437_s13, %s1437_s13 }
  0x1a   : > { %p1440_p7 = pnand %p1438_p3, %p1428_p0  ;;  %p1447_p12 = por %p1446_p10, %p1445_p9 }
  0x1c   : > { %p1441_p8 = pneg %p1440_p7 }
  0x1e   : > { %p1448_p1 = pnand %p1447_p12, %p1441_p8 }
  0x20   : > { %1451 = shalt.err (!%p1448_p1)
}
  0x21   : > { %s1576_s14 = smov 64   ;;  %s1577_s15 = smov 4  }
  0x22   : > { %1314 = dma.hbm_to_vmem [thread:$0]  (!%p1684_p2), %s1865_s1, 6272, %s176_s9, [#allocation6], %s1576_s14, %s1576_s14, %s1577_s15  }
  0x23   : > { %s1463_s23 = scalar_lea.vmem %s192_s12, 1024  ;;  %p1471_p11 = scmp.lt.s32.totalorder %s192_s12, %s192_s12 }
  0x24   : > { %p1464_p4 = scmp.ne.s32.totalorder %s192_s12, %s1463_s23  ;;  %p1472_p6 = scmp.lt.s32.totalorder %s1463_s23, %s1463_s23 }
  0x26   : > { %p1466_p3 = pnand %p1464_p4, %p1428_p0  ;;  %p1473_p9 = por %p1472_p6, %p1471_p11 }
  0x28   : > { %p1467_p7 = pneg %p1466_p3 }
  0x2a   : > { %p1474_p12 = pnand %p1473_p9, %p1467_p7 }
  0x2c   : > { %1477 = shalt.err (!%p1474_p12)
}
  0x2d   : > { %1317 = dma.hbm_to_vmem [thread:$0]  (!%p1684_p2), %s1867_s3, 1024, %s192_s12, [#allocation6], %s1576_s14, %s1576_s14, %s1577_s15  }
  0x2e   : > { %p1113_p8 = scmp.ge.s32.totalorder %s1572_s21, 2 }
  0x30   : > { %204 = sbr.rel (%p1113_p8) target bundleno = 87 (0x57), region = 32 }
  0x35   : > { %207 = sbr.rel (!%p1655_p5) target bundleno = 87 (0x57), region = 36  ;;  %s208_s8 = sand.u32 (%p1655_p5), 1, %s1568_s20  }
  0x36   : > { %s1114_s9 = sshll.u32 (%p1655_p5), %s1572_s21, 1  ;;  %s1298_s11 = smul.u32 (%p1655_p5), 112, %s208_s8 }
  0x37   : > { %s214_s13 = ssub.s32 (%p1655_p5), 3, %s1114_s9  ;;  %s1716_s14 = scalar_lea.sflag (%p1655_p5), [#allocation3], %s208_s8 }
  0x38   : > { %p215_p4 = scmp.lt.s32.totalorder (%p1655_p5), %s214_s13, 2  ;;  %s212_s15 = scalar_lea.vmem (%p1655_p5), [#allocation2], %s1298_s11 }
  0x3a   : > { %s1888_s13 = smov (!%p215_p4, %s214_s13), 2 }
  0x3b   : > { %s1713_s10 = smul.u32 896, %s1888_s13 }
  0x3d   : > { %s220_s12 = ssub.s32 1792, %s1713_s10 }
  0x3e   : > { %221 = vsyncadd %s1716_s14, %s220_s12  ;;  %p1117_p5 = scmp.ne.s32.totalorder %s1713_s10, 0  ;;  %s1299_s28 = smul.u32 1792, %s1572_s21 }
  0x3f   : > { %s227_s16 = sshll.u32 %s212_s15, 4  ;;  %s1482_s11 = scalar_lea.hbm %s1864_s0, 2688  ;;  %s1726_s16 = int_to_ptr.vmem [resolvable:$true] %s227_s16 }
  0x40   : > { %s1724_s25 = scalar_lea.hbm %s1864_s0, %s1299_s28 }
  0x41   : > { %s1478_s26 = scalar_lea.hbm %s1724_s25, %s1713_s10  ;;  %p1483_p0 = scmp.lt.s32.totalorder %s1724_s25, %s1864_s0 }
  0x42   : > { %p1479_p6 = scmp.ne.s32.totalorder %s1724_s25, %s1478_s26  ;;  %p1484_p10 = scmp.lt.s32.totalorder %s1482_s11, %s1478_s26 }
  0x44   : > { %p1480_p11 = pnand %p1479_p6, %p1117_p5  ;;  %p1485_p1 = por %p1484_p10, %p1483_p0 }
  0x46   : > { %p1481_p2 = pneg %p1480_p11 }
  0x48   : > { %p1486_p3 = pnand %p1485_p1, %p1481_p2 }
  0x4a   : > { %1489 = shalt.err (!%p1486_p3)
}
  0x4b   : > { %s1490_s15 = scalar_lea.vmem %s1726_s16, %s1713_s10  ;;  %s1578_s28 = smov [#allocation2]  }
  0x4c   : > { %p1491_p7 = scmp.ne.s32.totalorder %s1726_s16, %s1490_s15  ;;  %s1494_s17 = sshll.u32 %s1578_s28, 4  ;;  %s1495_s17 = int_to_ptr.vmem [resolvable:$false] %s1494_s17 }
  0x4d   : > { %s1496_s23 = scalar_lea.vmem %s1495_s17, 3584  ;;  %p1497_p4 = scmp.lt.s32.totalorder %s1726_s16, %s1495_s17 }
  0x4e   : > { %p1492_p9 = pnand %p1491_p7, %p1117_p5  ;;  %p1498_p6 = scmp.lt.s32.totalorder %s1496_s23, %s1490_s15 }
  0x50   : > { %p1493_p12 = pneg %p1492_p9  ;;  %p1499_p11 = por %p1498_p6, %p1497_p4 }
  0x52   : > { %p1500_p0 = pnand %p1499_p11, %p1493_p12 }
  0x54   : > { %1503 = shalt.err (!%p1500_p0)
}
  0x55   : > { %s1579_s26 = smov 896   ;;  %s1580_s8 = smov 56  }
  0x56   : > { %233 = dma.hbm_to_vmem [thread:$0]  (%p1117_p5), %s1724_s25, %s1713_s10, %s1726_s16, %s1716_s14, %s1579_s26, %s1579_s26, %s1580_s8  }
  0x57 PF: > { %239 = sbr.rel (%p1676_p13) target bundleno = 597 (0x255), region = 40  ;;  %s1755_s9 = sand.u32 (!%p1676_p13), 1, %s1564_s19  }
  0x58   : > { %s1300_s11 = smul.u32 (!%p1676_p13), 112, %s1755_s9  ;;  %s242_s13 = scalar_lea.sflag (!%p1676_p13), [#allocation3], %s1755_s9 }
  0x59   : > { %p1878_p2 = scmp.ne.s32.totalorder (!%p1676_p13), %s1873_s29, 0 }
  0x5a   : > { %s1759_s12 = scalar_lea.vmem (!%p1676_p13), [#allocation2], %s1300_s11 }
  0x5c   : > { %1547 = dma.done.wait (%p1878_p2), %s242_s13, 1792  }
  0x5d   : > { %1549 = vsyncadd (%p1878_p2), %s242_s13, 4294965504  ;;  %p1879_p5 = scmp.eq.s32.totalorder %s1637_s22, 0 }
  0x5f   : > { %1551 = dma.done.wait (%p1879_p5), [#allocation6], 7296   ;;  %p1880_p13 = pmov %p1879_p5 }
  0x60   : > { %v1369_v0 = vld [vmem:[#allocation5 + $0x78] sm:$0xff]   ;;  %v1373_v4 = vld [vmem:[#allocation5 + $0x70] sm:$0xff]   ;;  %v1377_v8 = vld [vmem:[#allocation5 + $0x68] sm:$0xff]   ;;  %v1581_v43 = vmov 0.0   ;;  %vm1582_vm0 = vmmov 0   ;;  %vm712_vm1 = vcmask 130048  }
  0x61   : > { %1553 = vsyncadd (%p1880_p13), [#allocation6], 4294960000  ;;  %v1370_v1 = vld [vmem:[#allocation5 + $0x38] sm:$0xff]   ;;  %1195 = vmatprep.subr.bf16.mxu0 %v1369_v0  ;;  %v1374_v5 = vld [vmem:[#allocation5 + $0x30] sm:$0xff]   ;;  %s1124_s10 = sshll.u32 %s1755_s9, 4  ;;  %s998_s15 = scalar_lea.sflag [#allocation4], %s1755_s9 }
  0x62   : > { %v1371_v2 = vld [vmem:[#allocation5 + $0xf8] sm:$0xff]   ;;  %1196 = vmatpush3.bf16.msra.mxu0 %v1370_v1  ;;  %v1375_v6 = vld [vmem:[#allocation5 + $0xf0] sm:$0xff]   ;;  %v1378_v9 = vld [vmem:[#allocation5 + $0x28] sm:$0xff]   ;;  %s279_s25 = scalar_lea.vmem [#allocation8], %s1124_s10  ;;  %p1881_p10 = scmp.ne.s32.totalorder %s1874_s30, 0 }
  0x63   : > { %v1372_v3 = vld [vmem:[#allocation5 + $0xb8] sm:$0xff]   ;;  %1217 = vmatprep.subr.bf16.mxu1 %v1371_v2  ;;  %1197 = vmatprep.subr.bf16.mxu0 %v1373_v4  ;;  %v1376_v7 = vld [vmem:[#allocation5 + $0xb0] sm:$0xff]   ;;  %v1379_v10 = vld [vmem:[#allocation5 + $0xe8] sm:$0xff]   ;;  %s1186_s28 = sshll.u32 (%p1881_p10), %s1637_s22, 1 }
  0x64   : > { %1218 = vmatpush3.bf16.msra.mxu1 %v1372_v3  ;;  %v1380_v11 = vld [vmem:[#allocation5 + $0xa8] sm:$0xff]   ;;  %v1381_v12 = vld [vmem:[#allocation5 + $0x60] sm:$0xff]   ;;  %v1385_v16 = vld [vmem:[#allocation5 + $0x58] sm:$0xff]   ;;  %s1006_s17 = ssub.s32 (%p1881_p10), 3, %s1186_s28 }
  0x65   : > { %1219 = vmatprep.subr.bf16.mxu1 %v1375_v6  ;;  %v1382_v13 = vld [vmem:[#allocation5 + $0x20] sm:$0xff]   ;;  %v1386_v17 = vld [vmem:[#allocation5 + $0x18] sm:$0xff]   ;;  %v1389_v20 = vld [vmem:[#allocation5 + $0x50] sm:$0xff]   ;;  %p1007_p1 = scmp.lt.s32.totalorder (%p1881_p10), %s1006_s17, 2 }
  0x66   : > { %1198 = vmatpush3.bf16.msra.mxu0 %v1374_v5  ;;  %v1383_v14 = vld [vmem:[#allocation5 + $0xe0] sm:$0xff]   ;;  %v1387_v18 = vld [vmem:[#allocation5 + $0xd8] sm:$0xff]   ;;  %v1390_v21 = vld [vmem:[#allocation5 + $0x10] sm:$0xff]  }
  0x67   : > { %1199 = vmatprep.subr.bf16.mxu0 %v1377_v8  ;;  %v1384_v15 = vld [vmem:[#allocation5 + $0xa0] sm:$0xff]   ;;  %v1388_v19 = vld [vmem:[#allocation5 + $0x98] sm:$0xff]   ;;  %v1391_v22 = vld [vmem:[#allocation5 + $0xd0] sm:$0xff]  }
  0x68   : > { %1220 = vmatpush3.bf16.msra.mxu1 %v1376_v7  ;;  %v1392_v23 = vld [vmem:[#allocation5 + $0x90] sm:$0xff]   ;;  %v1393_v24 = vld [vmem:[#allocation5 + $0x48] sm:$0xff]   ;;  %v1397_v28 = vld [vmem:[#allocation5 + $0x40] sm:$0xff]  }
  0x69   : > { %1221 = vmatprep.subr.bf16.mxu1 %v1379_v10  ;;  %v1394_v25 = vld [vmem:[#allocation5 + $0x8] sm:$0xff]   ;;  %v1398_v29 = vld [vmem:[#allocation5] sm:$0xff]   ;;  %v1401_v38 = vld [vmem:[#allocation5 + $0x178] sm:$0xff]  }
  0x6a   : > { %1200 = vmatpush3.bf16.msra.mxu0 %v1378_v9  ;;  %v1395_v26 = vld [vmem:[#allocation5 + $0xc8] sm:$0xff]   ;;  %v1399_v30 = vld [vmem:[#allocation5 + $0xc0] sm:$0xff]   ;;  %v1402_v42 = vld [vmem:[#allocation5 + $0x138] sm:$0xff]  }
  0x6b   : > { %1201 = vmatprep.subr.bf16.mxu0 %v1381_v12  ;;  %v1396_v27 = vld [vmem:[#allocation5 + $0x88] sm:$0xff]   ;;  %v300_v32 = vld [vmem:[%s1759_s12 + $0x40] sm:$0xff]  ;;  %v302_v40 = vld [vmem:[%s1759_s12 + $0x50] sm:$0xff] }
  0x6c   : > { %1222 = vmatpush3.bf16.msra.mxu1 %v1380_v11  ;;  %v293_v31 = vld [vmem:[%s1759_s12 + $0x8] sm:$0xff]  ;;  %v1400_v34 = vld [vmem:[#allocation5 + $0x80] sm:$0xff]   ;;  %v299_v36 = vld [vmem:[%s1759_s12 + $0x38] sm:$0xff] }
  0x6d   : > { %1223 = vmatprep.subr.bf16.mxu1 %v1383_v14  ;;  %v307_v33 = vpack.c.bf16 %v300_v32, %v293_v31  ;;  %v292_v35 = vld [vmem:[%s1759_s12] sm:$0xff]  ;;  %v295_v39 = vld [vmem:[%s1759_s12 + $0x18] sm:$0xff]  ;;  %v294_v44 = vld [vmem:[%s1759_s12 + $0x10] sm:$0xff] }
  0x6e   : > { %1202 = vmatpush3.bf16.msra.mxu0 %v1382_v13  ;;  %v306_v37 = vpack.c.bf16 %v299_v36, %v292_v35  ;;  %v309_v41 = vpack.c.bf16 %v302_v40, %v295_v39  ;;  %v301_v45 = vld [vmem:[%s1759_s12 + $0x48] sm:$0xff]  ;;  %v1403_v47 = vld [vmem:[#allocation5 + $0x170] sm:$0xff]   ;;  %v1407_v51 = vld [vmem:[#allocation5 + $0x160] sm:$0xff]  }
  0x6f   : > { %1203 = vmatprep.subr.bf16.mxu0 %v1385_v16  ;;  %748 = vmatprep.mubr.bf16.mxu0 %v307_v33  ;;  %v308_v46 = vpack.c.bf16 %v301_v45, %v294_v44  ;;  %v1404_v48 = vld [vmem:[#allocation5 + $0x130] sm:$0xff]   ;;  %v1405_v49 = vld [vmem:[#allocation5 + $0x168] sm:$0xff]   ;;  %v1408_v52 = vld [vmem:[#allocation5 + $0x120] sm:$0xff]  }
  0x70   : > { %1224 = vmatpush3.bf16.msra.mxu1 %v1384_v15  ;;  %789 = vmatprep.mubr.bf16.mxu1 %v309_v41  ;;  %v1406_v50 = vld [vmem:[#allocation5 + $0x128] sm:$0xff]   ;;  %v1409_v53 = vld [vmem:[#allocation5 + $0x158] sm:$0xff]   ;;  %v1411_v55 = vld [vmem:[#allocation5 + $0x150] sm:$0xff]  }
  0x71   : > { %1225 = vmatprep.subr.bf16.mxu1 %v1387_v18  ;;  %v1410_v54 = vld [vmem:[#allocation5 + $0x118] sm:$0xff]   ;;  %v1417_v56 = vld [vmem:[#allocation5 + $0x180] sm:$0xff]   ;;  %v1412_v58 = vld [vmem:[#allocation5 + $0x110] sm:$0xff]  }
  0x72   : > { %1204 = vmatpush3.bf16.msra.mxu0 %v1386_v17  ;;  %v297_v57 = vld [vmem:[%s1759_s12 + $0x28] sm:$0xff]  ;;  %v304_v60 = vld [vmem:[%s1759_s12 + $0x60] sm:$0xff]  ;;  %v298_v62 = vld [vmem:[%s1759_s12 + $0x30] sm:$0xff] }
  0x73   : > { %1205 = vmatprep.subr.bf16.mxu0 %v1389_v20  ;;  %v1413_v59 = vld [vmem:[#allocation5 + $0x148] sm:$0xff]   ;;  %v311_v61 = vpack.c.bf16 %v304_v60, %v297_v57  ;;  %v1415_v2 = vld [vmem:[#allocation5 + $0x140] sm:$0xff]   ;;  %v1419_v8 = vld [vmem:[#allocation7 + $0x30] sm:$0xff]  }
  0x74   : > { %1226 = vmatpush3.bf16.msra.mxu1 %v1388_v19  ;;  %v305_v63 = vld [vmem:[%s1759_s12 + $0x68] sm:$0xff]  ;;  %v1416_v3 = vld [vmem:[#allocation5 + $0x100] sm:$0xff]   ;;  %v303_v5 = vld [vmem:[%s1759_s12 + $0x58] sm:$0xff] }
  0x75   : > { %1227 = vmatprep.subr.bf16.mxu1 %v1391_v22  ;;  %v312_v0 = vpack.c.bf16 %v305_v63, %v298_v62  ;;  %v1414_v1 = vld [vmem:[#allocation5 + $0x108] sm:$0xff]   ;;  %v296_v4 = vld [vmem:[%s1759_s12 + $0x20] sm:$0xff]  ;;  %v1423_v12 = vld [vmem:[#allocation7 + $0x10] sm:$0xff]  }
  0x76   : > { %1206 = vmatpush3.bf16.msra.mxu0 %v1390_v21  ;;  %v310_v6 = vpack.c.bf16 %v303_v5, %v296_v4  ;;  %v1418_v7 = vld [vmem:[#allocation7 + $0x38] sm:$0xff]   ;;  %v1420_v9 = vld [vmem:[#allocation7 + $0x28] sm:$0xff]   ;;  %v1421_v10 = vld [vmem:[#allocation7 + $0x20] sm:$0xff]  }
  0x77   : > { %1207 = vmatprep.subr.bf16.mxu0 %v1393_v24  ;;  %v1422_v11 = vld [vmem:[#allocation7 + $0x18] sm:$0xff]   ;;  %v1424_v13 = vld [vmem:[#allocation7 + $0x8] sm:$0xff]   ;;  %v1425_v14 = vld [vmem:[#allocation7] sm:$0xff]  }
  0x78   : > { %1228 = vmatpush3.bf16.msra.mxu1 %v1392_v23 }
  0x79   : > { %1229 = vmatprep.subr.bf16.mxu1 %v1395_v26 }
  0x7a   : > { %1208 = vmatpush3.bf16.msra.mxu0 %v1394_v25 }
  0x7b   : > { %1209 = vmatprep.subr.bf16.mxu0 %v1397_v28 }
  0x7c   : > { %1230 = vmatpush3.bf16.msra.mxu1 %v1396_v27  ;;  %v1125_v27 = vld [vmem:[%s1866_s2] ss:$0 sm:$0xff] }
  0x7d   : > { %1231 = vmatprep.subr.bf16.mxu1 %v1399_v30 }
  0x7e   : > { %1210 = vmatpush3.bf16.msra.mxu0 %v1398_v29 }
  0x7f   : > { %1239 = vmatprep.subr.bf16.mxu0 %v1401_v38 }
  0x80   : > { %1232 = vmatpush3.bf16.msra.mxu1 %v1400_v34 }
  0x81   : > { %1272 = vmatprep.subr.bf16.mxu1 %v1581_v43  ;;  %749 = vmatmul.mubr.bf16.vlgmr.msra.gmra.mxu0 %v306_v37 }
  0x82   : > { %1240 = vmatpush3.bf16.msra.mxu0 %v1402_v42  ;;  %830 = vmatprep.mubr.bf16.mxu0 %v311_v61 }
  0x83   : > { %790 = vmatmul.mubr.bf16.vlgmr.msra.gmra.mxu1 %v308_v46  ;;  %1241 = vmatprep.subr.bf16.mxu0 %v1403_v47 }
  0x84   : > { %1274 = vmatprep.mubr.msk.bf16.mxu1 %vm1582_vm0, %v1581_v43  ;;  %1273 = vmatpush3.bf16.msra.mxu1 %v1417_v56 }
  0x85   : > { %1278 = vmatprep.subr.bf16.mxu1 %v1581_v43 }
  0x86   : > { %1242 = vmatpush3.bf16.msra.mxu0 %v1404_v48 }
  0x87   : > { %1243 = vmatprep.subr.bf16.mxu0 %v1405_v49  ;;  %v1176_v49 = vld [vmem:[%s1868_s4] ss:$0 sm:$0xff] }
  0x8a   : > { %1244 = vmatpush3.bf16.msra.mxu0 %v1406_v50 }
  0x8b   : > { %1245 = vmatprep.subr.bf16.mxu0 %v1407_v51  ;;  %1275 = vmatmul.mubr.msk.bf16.vlgmr.msra.gmra.mxu1 %vm712_vm1, %v312_v0 }
  0x8c   : > { %1294 = vmatprep.mubr.msk.bf16.mxu1 %vm1582_vm0, %v1581_v43  ;;  %1279 = vmatpush3.bf16.msra.mxu1 %v1418_v7 }
  0x8d   : > { %1280 = vmatprep.subr.bf16.mxu1 %v1581_v43 }
  0x8e   : > { %1246 = vmatpush3.bf16.msra.mxu0 %v1408_v52 }
  0x8f   : > { %1247 = vmatprep.subr.bf16.mxu0 %v1409_v53 }
  0x90   : > { %1281 = vmatpush3.bf16.msra.mxu1 %v1419_v8 }
  0x91   : > { %1282 = vmatprep.subr.bf16.mxu1 %v1581_v43 }
  0x92   : > { %1248 = vmatpush3.bf16.msra.mxu0 %v1410_v54 }
  0x93   : > { %1249 = vmatprep.subr.bf16.mxu0 %v1411_v55 }
  0x94   : > { %1283 = vmatpush3.bf16.msra.mxu1 %v1420_v9 }
  0x95   : > { %1284 = vmatprep.subr.bf16.mxu1 %v1581_v43 }
  0x96   : > { %1250 = vmatpush3.bf16.msra.mxu0 %v1412_v58 }
  0x97   : > { %1251 = vmatprep.subr.bf16.mxu0 %v1413_v59 }
  0x98   : > { %1285 = vmatpush3.bf16.msra.mxu1 %v1421_v10 }
  0x99   : > { %1286 = vmatprep.subr.bf16.mxu1 %v1581_v43 }
  0x9a   : > { %1252 = vmatpush3.bf16.msra.mxu0 %v1414_v1 }
  0x9b   : > { %1253 = vmatprep.subr.bf16.mxu0 %v1415_v2 }
  0x9c   : > { %1287 = vmatpush3.bf16.msra.mxu1 %v1422_v11 }
  0x9d   : > { %1288 = vmatprep.subr.bf16.mxu1 %v1581_v43 }
  0x9e   : > { %1254 = vmatpush3.bf16.msra.mxu0 %v1416_v3 }
  0xa0   : > { %1289 = vmatpush3.bf16.msra.mxu1 %v1423_v12 }
  0xa1   : > { %831 = vmatmul.mubr.bf16.vlgmr.msra.gmra.mxu0 %v310_v6  ;;  %1290 = vmatprep.subr.bf16.mxu1 %v1581_v43 }
  0xa4   : > { %1291 = vmatpush3.bf16.msra.mxu1 %v1424_v13 }
  0xa5   : > { %1292 = vmatprep.subr.bf16.mxu1 %v1581_v43 }
  0xa8   : > { %1293 = vmatpush3.bf16.msra.mxu1 %v1425_v14 }
 0x141   : > { %v1211_v18 = vpop.f32.mrf.mxu0 }
 0x143   : > { %v1233_v15 = vpop.f32.mrf.mxu1  ;;  %v1212_v20 = vpop.f32.mrf.mxu0 }
 0x144   : > { %v1213_v26 = vadd.f32 %v1212_v20, %v1211_v18 }
 0x145   : > { %v1234_v16 = vpop.f32.mrf.mxu1  ;;  %v1214_v23 = vpop.f32.mrf.mxu0 }
 0x146   : > { %v751_v29 = vadd.f32 %v1213_v26, %v1125_v27  ;;  %v1235_v30 = vadd.f32 %v1234_v16, %v1233_v15 }
 0x147   : > { %v1236_v17 = vpop.f32.mrf.mxu1  ;;  %v1215_v28 = vpop.f32.mrf.mxu0 }
 0x148   : > { %v1216_v31 = vadd.f32 %v1215_v28, %v1214_v23  ;;  %v792_v34 = vadd.f32 %v1235_v30, %v751_v29 }
 0x149   : > { %v1237_v19 = vpop.f32.mrf.mxu1 }
 0x14a   : > { %v754_v35 = vadd.f32 %v1216_v31, %v1125_v27  ;;  %v1238_v36 = vadd.f32 %v1237_v19, %v1236_v17 }
 0x14b   : > { %v873_v21 = vpop.f32.mrf.mxu1 }
 0x14c   : > { %v795_v41 = vadd.f32 %v1238_v36, %v754_v35 }
 0x14d   : > { %v1276_v22 = vpop.f32.mrf.mxu1 }
 0x14f   : > { %v876_v24 = vpop.f32.mrf.mxu1 }
 0x151   : > { %v1277_v25 = vpop.f32.mrf.mxu1 }
 0x161   : > { %v1255_v32 = vpop.f32.mrf.mxu0 }
 0x163   : > { %v1256_v33 = vpop.f32.mrf.mxu0 }
 0x164   : > { %v1257_v37 = vadd.f32 %v1256_v33, %v1255_v32 }
 0x165   : > { %v1258_v38 = vpop.f32.mrf.mxu0 }
 0x166   : > { %v833_v39 = vadd.f32 %v1257_v37, %v792_v34 }
 0x167   : > { %v1259_v40 = vpop.f32.mrf.mxu0 }
 0x168   : > { %v1260_v42 = vadd.f32 %v1259_v40, %v1258_v38  ;;  %v874_v43 = vadd.f32 %v873_v21, %v833_v39 }
 0x16a   : > { %v836_v44 = vadd.f32 %v1260_v42, %v795_v41  ;;  %v880_v46 = vmax.f32 %v874_v43, 0.0 }
 0x16c   : > { %v877_v45 = vadd.f32 %v876_v24, %v836_v44 }
 0x16e   : > { %v881_v47 = vmax.f32 %v877_v45, 0.0 }
 0x170   : > { %v882_v48 = vpack.c.bf16 %v881_v47, %v880_v46 }
 0x172   : > { %1295 = vmatmul.mubr.bf16.vlgmr.msra.gmra.mxu1 %v882_v48 }
 0x232   : > { %v988_v50 = vpop.f32.mrf.mxu1 }
 0x233   : > { %v989_v51 = vadd.f32 %v1176_v49, %v988_v50 }
 0x234   : > { %v1296_v52 = vpop.f32.mrf.mxu1 }
 0x235   : > { %995 = vst [vmem:[%s279_s25] sm:$0xff] %v989_v51  ;;  %1004 = sbr.rel (!%p1881_p10) target bundleno = 597 (0x255), region = 56 }
 0x236   : > { %v991_v53 = vpop.f32.mrf.mxu1 }
 0x237   : > { %v992_v54 = vadd.f32 %v1176_v49, %v991_v53 }
 0x238   : > { %v1297_v55 = vpop.f32.mrf.mxu1 }
 0x239   : > { %996 = vst [vmem:[%s279_s25 + $0x8] sm:$0xff] %v992_v54 }
 0x23a   : > { %s1890_s17 = smov (!%p1007_p1, %s1006_s17), 2 }
 0x23b   : > { %s1807_s23 = sshll.u32 %s1890_s17, 7 }
 0x23c   : > { %s1011_s26 = ssub.s32 256, %s1807_s23 }
 0x23d   : > { %1012 = vsyncadd %s998_s15, %s1011_s26  ;;  %p1188_p3 = scmp.ne.s32.totalorder %s1807_s23, 0  ;;  %s1194_s8 = sshll.u32 %s1637_s22, 8 }
 0x23e   : > { %s1817_s13 = scalar_lea.hbm %s1869_s5, %s1194_s8  ;;  %s1017_s12 = sshll.u32 %s279_s25, 4  ;;  %s1819_s12 = int_to_ptr.vmem [resolvable:$true] %s1017_s12 }
 0x23f   : > { %s1504_s29 = scalar_lea.vmem %s1819_s12, %s1807_s23  ;;  %s1583_s7 = smov [#allocation8]  }
 0x240   : > { %p1505_p7 = scmp.ne.s32.totalorder %s1819_s12, %s1504_s29  ;;  %s1508_s10 = sshll.u32 %s1583_s7, 4  ;;  %s1509_s10 = int_to_ptr.vmem [resolvable:$false] %s1508_s10 }
 0x241   : > { %s1510_s22 = scalar_lea.vmem %s1509_s10, 512  ;;  %p1511_p4 = scmp.lt.s32.totalorder %s1819_s12, %s1509_s10 }
 0x242   : > { %p1506_p9 = pnand %p1505_p7, %p1188_p3  ;;  %p1512_p6 = scmp.lt.s32.totalorder %s1510_s22, %s1504_s29 }
 0x244   : > { %p1507_p12 = pneg %p1506_p9  ;;  %p1513_p11 = por %p1512_p6, %p1511_p4 }
 0x246   : > { %p1514_p0 = pnand %p1513_p11, %p1507_p12 }
 0x248   : > { %1517 = shalt.err (!%p1514_p0)
}
 0x249   : > { %s1518_s14 = scalar_lea.hbm %s1817_s13, %s1807_s23  ;;  %s1522_s28 = scalar_lea.hbm %s1869_s5, 384 }
 0x24a   : > { %p1519_p2 = scmp.ne.s32.totalorder %s1817_s13, %s1518_s14  ;;  %p1523_p10 = scmp.lt.s32.totalorder %s1817_s13, %s1869_s5 }
 0x24b   : > { %p1524_p1 = scmp.lt.s32.totalorder %s1522_s28, %s1518_s14 }
 0x24c   : > { %p1520_p5 = pnand %p1519_p2, %p1188_p3 }
 0x24d   : > { %p1525_p7 = por %p1524_p1, %p1523_p10 }
 0x24e   : > { %p1521_p13 = pneg %p1520_p5 }
 0x250   : > { %p1526_p9 = pnand %p1525_p7, %p1521_p13 }
 0x252   : > { %1529 = shalt.err (!%p1526_p9)
}
 0x253   : > { %s1584_s8 = smov 128   ;;  %s1585_s30 = smov 8  }
 0x254   : > { %1023 = dma.vmem_to_hbm [thread:$0]  (%p1188_p3), %s1819_s12, %s1807_s23, %s1817_s13, %s998_s15, %s1584_s8, %s1584_s8, %s1585_s30  }
 0x255 PF: > { %s1032_s11 = sand.u32 1, %s1560_s18   ;;  %p1882_p12 = scmp.ne.s32.totalorder %s1875_s6, 0 }
 0x256   : > { %s1033_s29 = scalar_lea.sflag [#allocation4], %s1032_s11 }
 0x257   : > { %p1319_p4 = pnand %p1113_p8, %p1882_p12 }
 0x259   : > { %p1320_p6 = pneg %p1319_p4 }
 0x25b   : > { %1555 = dma.done.wait (%p1320_p6), %s1033_s29, 256  }
 0x25c   : > { %1557 = vsyncadd (%p1320_p6), %s1033_s29, 4294967040  ;;  %p19_p11 = scmp.ge.s32.totalorder %s1641_s24, 4   ;;  %s1883_s18 = smov %s1564_s19 }
 0x25d   : > { %s1884_s19 = smov %s1568_s20  ;;  %s1885_s20 = smov %s1653_s27 }
 0x25e   : > { %s1886_s21 = smov %s1641_s24  ;;  %21 = sbr.rel (!%p19_p11) target bundleno = 6 (0x6), region = 93 }
 0x263   :  { %1038 = vsyncpa [#allocation3], 1 }
 0x264   :  { %1040 = vsyncpa [#allocation3 + $0x1], 1 }
 0x265   :  { %1041 = vsyncpa [#allocation6], 1 }
 0x266   :  { %1042 = vsyncpa [#allocation4], 1 }
 0x267   :  { %1044 = vsyncpa [#allocation4 + $0x1], 1 }

</bundles_post_ra>
